<compile_context>
chip_gen: v5e
topology: v5e:2x2
jax: 0.10.0
libtpu: 0.0.40
codegen_flags: <defaults>
</compile_context>

<pallas_src>
import jax
import jax.numpy as jnp
from jax.experimental import pallas as pl
from jax.experimental.pallas import tpu as pltpu  # noqa: F401  (TPU backend)

M, K, N = 3, 3, 3


def _model_kernel(packed_ref, out_ref):
    # packed_ref: (4, 3, 3) VMEM ref -> [x1, x2, inp, v0]
    x1 = packed_ref[0]    # (M, K)
    x2 = packed_ref[1]    # (K, N)
    inp = packed_ref[2]   # (M, N)
    v0 = packed_ref[3]    # (M, N)

    # v1[m, n] = sum_k x1[m, k] * x2[k, n]  -- K=3, statically unrolled on the
    # VPU (broadcast mul-adds); avoids MXU systolic fill/drain for 27 FLOPs.
    v1 = x1[:, 0:1] * x2[0:1, :]
    v1 = v1 + x1[:, 1:2] * x2[1:2, :]
    v1 = v1 + x1[:, 2:3] * x2[2:3, :]

    # Original graph with v3 == v1:
    #   v2 = v1 + inp; v4 = v2 + v1; v5 = v2 * v1; out = v4 + v5 + v0
    # fused:  out = v1*(v1 + inp + 2) + inp + v0
    out_ref[...] = v1 * (v1 + inp + 2.0) + inp + v0


def model_forward(x1, x2, v0, inp):
    """x1, x2, v0, inp: (3, 3) float32 arrays. Returns (3, 3) float32."""
    m, k = x1.shape
    _, n = x2.shape

    # One input DMA instead of four: stack the operands on a new leading axis.
    packed = jnp.stack([x1, x2, inp, v0]).astype(jnp.float32)  # (4, m, n)

    return pl.pallas_call(
        _model_kernel,
        out_shape=jax.ShapeDtypeStruct((m, n), jnp.float32),
        in_specs=[
            # Full-array block (block == array dims bypasses (8,128) rule).
            pl.BlockSpec((4, m, k), lambda: (0, 0, 0)),
        ],
        out_specs=pl.BlockSpec((m, n), lambda: (0, 0)),
    )(packed)


if __name__ == "__main__":
    key = jax.random.PRNGKey(0)
    k1, k2, k3, k4 = jax.random.split(key, 4)

    # Deterministic inputs matching the module's (3, 3) shapes.
    x1 = jax.random.normal(k1, (M, K), dtype=jnp.float32)
    x2 = jax.random.normal(k2, (K, N), dtype=jnp.float32)
    v0 = jax.random.normal(k3, (M, N), dtype=jnp.float32)
    inp = jax.random.normal(k4, (M, N), dtype=jnp.float32)  # self.inp parameter

    out = model_forward(x1, x2, v0, inp)
    out = jax.block_until_ready(out)

    # Reference in plain JAX (same math, full-precision matmul).
    v1 = jnp.dot(x1, x2, precision=jax.lax.Precision.HIGHEST)
    v2 = v1 + inp
    v3 = v1
    ref = (v2 + v3) + (v2 * v3) + v0
    assert jnp.allclose(out, ref, atol=1e-5, rtol=1e-5), (out, ref)

    print("KERNEL_OK")
</pallas_src>

<mosaic_0001>
module attributes {stable_mosaic.version = 11 : i64} {
  func.func @_model_kernel(%arg0: memref<4x3x3xf32, #tpu.memory_space<vmem>>, %arg1: memref<3x3xf32, #tpu.memory_space<vmem>>) attributes {dimension_semantics = [], scalar_prefetch = 0 : i64, scratch_operands = 0 : i64, tpu.core_type = #tpu.core_type<tc>} {
    %c0 = arith.constant 0 : index
    %c0_0 = arith.constant 0 : index
    %c0_1 = arith.constant 0 : index
    %0 = vector.load %arg0[%c0, %c0_0, %c0_1] : memref<4x3x3xf32, #tpu.memory_space<vmem>>, vector<1x3x3xf32>
    %1 = vector.shape_cast %0 : vector<1x3x3xf32> to vector<3x3xf32>
    %c1 = arith.constant 1 : index
    %c0_2 = arith.constant 0 : index
    %c0_3 = arith.constant 0 : index
    %2 = vector.load %arg0[%c1, %c0_2, %c0_3] : memref<4x3x3xf32, #tpu.memory_space<vmem>>, vector<1x3x3xf32>
    %3 = vector.shape_cast %2 : vector<1x3x3xf32> to vector<3x3xf32>
    %c2 = arith.constant 2 : index
    %c0_4 = arith.constant 0 : index
    %c0_5 = arith.constant 0 : index
    %4 = vector.load %arg0[%c2, %c0_4, %c0_5] : memref<4x3x3xf32, #tpu.memory_space<vmem>>, vector<1x3x3xf32>
    %5 = vector.shape_cast %4 : vector<1x3x3xf32> to vector<3x3xf32>
    %c3 = arith.constant 3 : index
    %c0_6 = arith.constant 0 : index
    %c0_7 = arith.constant 0 : index
    %6 = vector.load %arg0[%c3, %c0_6, %c0_7] : memref<4x3x3xf32, #tpu.memory_space<vmem>>, vector<1x3x3xf32>
    %7 = vector.shape_cast %6 : vector<1x3x3xf32> to vector<3x3xf32>
    %8 = vector.extract_strided_slice %1 {offsets = [0, 0], sizes = [3, 1], strides = [1, 1]} : vector<3x3xf32> to vector<3x1xf32>
    %9 = vector.extract_strided_slice %3 {offsets = [0, 0], sizes = [1, 3], strides = [1, 1]} : vector<3x3xf32> to vector<1x3xf32>
    %10 = vector.broadcast %8 : vector<3x1xf32> to vector<3x3xf32>
    %11 = vector.broadcast %9 : vector<1x3xf32> to vector<3x3xf32>
    %12 = arith.mulf %10, %11 : vector<3x3xf32>
    %13 = vector.extract_strided_slice %1 {offsets = [0, 1], sizes = [3, 1], strides = [1, 1]} : vector<3x3xf32> to vector<3x1xf32>
    %14 = vector.extract_strided_slice %3 {offsets = [1, 0], sizes = [1, 3], strides = [1, 1]} : vector<3x3xf32> to vector<1x3xf32>
    %15 = vector.broadcast %13 : vector<3x1xf32> to vector<3x3xf32>
    %16 = vector.broadcast %14 : vector<1x3xf32> to vector<3x3xf32>
    %17 = arith.mulf %15, %16 : vector<3x3xf32>
    %18 = arith.addf %12, %17 : vector<3x3xf32>
    %19 = vector.extract_strided_slice %1 {offsets = [0, 2], sizes = [3, 1], strides = [1, 1]} : vector<3x3xf32> to vector<3x1xf32>
    %20 = vector.extract_strided_slice %3 {offsets = [2, 0], sizes = [1, 3], strides = [1, 1]} : vector<3x3xf32> to vector<1x3xf32>
    %21 = vector.broadcast %19 : vector<3x1xf32> to vector<3x3xf32>
    %22 = vector.broadcast %20 : vector<1x3xf32> to vector<3x3xf32>
    %23 = arith.mulf %21, %22 : vector<3x3xf32>
    %24 = arith.addf %18, %23 : vector<3x3xf32>
    %25 = arith.addf %24, %5 : vector<3x3xf32>
    %cst = arith.constant 2.000000e+00 : f32
    %26 = vector.broadcast %cst : f32 to vector<3x3xf32>
    %27 = arith.addf %25, %26 : vector<3x3xf32>
    %28 = arith.mulf %24, %27 : vector<3x3xf32>
    %29 = arith.addf %28, %5 : vector<3x3xf32>
    %30 = arith.addf %29, %7 : vector<3x3xf32>
    %c0_8 = arith.constant 0 : index
    %c0_9 = arith.constant 0 : index
    %31 = vector.load %arg1[%c0_8, %c0_9] : memref<3x3xf32, #tpu.memory_space<vmem>>, vector<3x3xf32>
    tpu.vector_store %arg1[%c0_8, %c0_9], %30 {strides = array<i32>} : memref<3x3xf32, #tpu.memory_space<vmem>>, vector<3x3xf32>,
    return
  }
}

</mosaic_0001>

<bundles_post_ra>
// kernel: tpu_custom_call.1
= control target key start
LH: loop header
LB: loop body
LE: loop exit
PB: predicated region body
PF: predicated region fallthrough
CT: control target
= control target key end

     0   :  { %v97_v1 = vmov 0   ;;  %v98_v2 = vmov 2   ;;  %s126_s0 = inlined_call_operand.vmem [shape: f32[4,3,3], index: 0, kind: input, shape index: {}]   ;;  %s127_s1 = inlined_call_operand.hbm [shape: f32[3,3], index: 1, kind: output, shape index: {}]  }
   0x1   :  { %v9_v0 = vld [vmem:[%s126_s0] sm:$0x7]  ;;  %67 = vset.pattern.permute.xlu0 %v97_v1  ;;  %69 = vset.pattern.permute.xlu1 %v98_v2 }
   0x2   :  { %6 = vsyncpa [#allocation3], 0  ;;  %18 = vperm.xlu0 %67, %v9_v0   ;;  %31 = vperm.xlu1 %69, %v9_v0   ;;  %v99_v3 = vmov 1   ;;  %v60_v5 = vld [vmem:[%s126_s0 + $0x4] sm:$0x7]  ;;  %s100_s14 = smov [#allocation2]  }
   0x3   :  { %v21_v6 = vperm.slane %v60_v5, 0  ;;  %v27_v7 = vperm.slane %v60_v5, 1  ;;  %v34_v8 = vperm.slane %v60_v5, 2  ;;  %v61_v15 = vld [vmem:[%s126_s0 + $0x8] sm:$0x7]  ;;  %s49_s15 = sshll.u32 %s100_s14, 4  ;;  %s50_s15 = int_to_ptr.vmem [resolvable:$true] %s49_s15 }
   0x4   :  { %v62_v20 = vld [vmem:[%s126_s0 + $0xc] sm:$0x7]  ;;  %s51_s18 = sshll.u32 %s127_s1, 4  ;;  %vm42_vm0 = vcmask 18432   ;;  %s52_s18 = int_to_ptr.hbm [resolvable:$true] %s51_s18 }
   0xa   :  { %68 = vset.pattern.permute.xlu0 %v99_v3 }
   0xb   :  { %24 = vperm.xlu0 %68, %v9_v0  }
  0x13   :  { %70 = vset.pattern.permute.xlu0 %v98_v2 }
  0x74   :  { %v19_v4 = vpop.permute.xlu0 %18  ;;  %v32_v9 = vpop.permute.xlu1 %31 }
  0x75   :  { %v22_v11 = vmul.f32 %v21_v6, %v19_v4  ;;  %v35_v13 = vmul.f32 %v34_v8, %v32_v9 }
  0x7d   :  { %v25_v10 = vpop.permute.xlu0 %24 }
  0x7e   :  { %v28_v12 = vmul.f32 %v27_v7, %v25_v10 }
  0x80   :  { %v29_v14 = vadd.f32 %v28_v12, %v22_v11 }
  0x82   :  { %v36_v16 = vadd.f32 %v35_v13, %v29_v14 }
  0x84   :  { %v37_v17 = vadd.f32 %v61_v15, %v36_v16 }
  0x86   :  { %v38_v18 = vadd.f32 2.0, %v37_v17 }
  0x88   :  { %v39_v19 = vmul.f32 %v38_v18, %v36_v16 }
  0x8a   :  { %v40_v21 = vadd.f32 %v61_v15, %v39_v19 }
  0x8c   :  { %v41_v22 = vadd.f32 %v62_v20, %v40_v21 }
  0x8e   :  { %43 = vst.msk [vmem:[#allocation2] sm:$0x7] %vm42_vm0, %v41_v22 }
  0x8f   :  { %54 = dma.vmem_to_hbm [thread:$0]  %s50_s15, 64, %s52_s18, [#allocation3]  }
  0x90   :  { %95 = dma.done.wait [#allocation3], 64  }
  0x91   :  { %96 = vsyncadd [#allocation3], 4294967232 }
  0x92   :  { %59 = vsyncpa [#allocation3], 1 }

</bundles_post_ra>
